<compile_context>
chip_gen: v5e
topology: v5e:2x2
jax: 0.10.0
libtpu: 0.0.40
codegen_flags: <defaults>
</compile_context>

<pallas_src>
import jax
import jax.numpy as jnp
import numpy as np
from jax.experimental import pallas as pl
from jax.experimental.pallas import tpu as pltpu

KERNEL_SIZE = 4
STRIDE = 2
LATTICE = 8          # KagomeConv2D hard-codes an 8x8 lattice (10x10 padded)

# 5-tap stencils (kh, kw) of the three masked convs and their 9-tap union.
UP_TAPS = ((0, 0), (0, 1), (1, 1), (2, 1), (2, 2))
LEFT_TAPS = ((1, 1), (2, 0), (2, 1), (2, 2), (3, 1))
RIGHT_TAPS = ((1, 1), (2, 1), (2, 2), (2, 3), (3, 3))
ALL_TAPS = tuple(sorted(set(UP_TAPS) | set(LEFT_TAPS) | set(RIGHT_TAPS)))  # 9 taps

# Boundary fixups applied to the zero-padded (10x10) input: dst <- src.
FIX_DST = ((0, 0), (0, 1), (0, 2), (0, 3), (1, 5), (2, 6), (3, 7), (4, 8),
           (6, 9), (7, 9), (8, 9), (9, 9), (9, 7), (9, 5), (8, 3), (6, 1),
           (4, 0), (2, 0))
FIX_SRC = ((8, 4), (8, 5), (8, 6), (8, 7), (5, 1), (6, 2), (7, 3), (8, 4),
           (2, 1), (3, 1), (4, 1), (5, 1), (1, 3), (1, 1), (4, 7), (2, 5),
           (8, 8), (6, 8))

# Output lattice sites zeroed at the end of forward().
ZERO_POS = ((0, 4), (0, 6), (1, 5), (1, 6), (1, 7), (2, 6), (3, 7),
            (5, 0), (6, 0), (7, 0), (7, 1), (7, 2))


def _gather_index():
    """Static (9*Ho*Wo,) indices into flattened x (zero slot at H*W) realizing
    zero-pad + the 18 boundary fixups + the 9-tap strided im2col in one take."""
    HW = LATTICE * LATTICE
    pmap = np.full((LATTICE + 2, LATTICE + 2), HW, dtype=np.int32)  # pad -> zero slot
    for i in range(1, LATTICE + 1):
        for j in range(1, LATTICE + 1):
            pmap[i, j] = (i - 1) * LATTICE + (j - 1)
    # every fixup source is an untouched original pixel -> simultaneous remap
    for (di, dj), (si, sj) in zip(FIX_DST, FIX_SRC):
        pmap[di, dj] = (si - 1) * LATTICE + (sj - 1)
    Ho = Wo = LATTICE // 2
    idx = np.empty((len(ALL_TAPS), Ho, Wo), dtype=np.int32)
    for t, (kh, kw) in enumerate(ALL_TAPS):
        for ho in range(Ho):
            for wo in range(Wo):
                idx[t, ho, wo] = pmap[kh + STRIDE * ho, kw + STRIDE * wo]
    return idx.reshape(-1)


def _zero_mask():
    m = np.ones((LATTICE, LATTICE), dtype=bool)
    for r, c in ZERO_POS:
        m[r, c] = False
    return m


_GATHER_IDX = _gather_index()
_ZERO_MASK = _zero_mask()


def kagome_fused_conv_kernel(p_ref, w_ref, b_ref, o_ref):
    """One lane tile of the fused 3-stencil conv (single MXU matmul).

    VMEM blocks:
      p_ref: (K, lane_tile)       bf16  im2col patches; lanes = flattened (n,ho,wo)
      w_ref: (3*Cout, K)          bf16  fused masked weights (rows = up|left|right)
      b_ref: (3*Cout, 1)          f32   fused bias
      o_ref: (3*Cout, lane_tile)  f32
    """
    acc = jnp.dot(w_ref[...], p_ref[...], preferred_element_type=jnp.float32)
    o_ref[...] = (acc + b_ref[...]).astype(o_ref.dtype)


def kagome_conv2d(x, w_up, b_up, w_left, b_left, w_right, b_right):
    """x: (N, Cin, 8, 8) NCHW; w_*: (Cout, Cin, 4, 4); b_*: (Cout,).

    Returns (N, Cout, 8, 8), matching KagomeConv2D.forward."""
    N, Cin, H, W = x.shape
    assert H == LATTICE and W == LATTICE, "KagomeConv2D hard-codes an 8x8 lattice"
    Cout = w_up.shape[0]
    Ho = Wo = LATTICE // 2
    T = len(ALL_TAPS)
    K = T * Cin
    M = N * Ho * Wo
    GC = 3 * Cout

    # Adaptive lane tile: multiple of 128 (unmasked full-lane stores), large
    # enough to amortize per-grid-step overhead, small enough to sit well
    # inside default scoped VMEM with double-buffering.
    vmem_budget = 4 << 20                                   # bytes per patches block
    cap = max(128, ((vmem_budget // (2 * K)) // 128) * 128)
    lane_tile = max(128, min(2048, cap, ((M + 127) // 128) * 128))
    num_tiles = pl.cdiv(M, lane_tile)
    M_pad = num_tiles * lane_tile

    # --- glue (XLA, fused): pad + fixups + 9-tap strided im2col = ONE gather -
    x_b = x.astype(jnp.bfloat16).reshape(N, Cin, H * W)
    x_ext = jnp.concatenate(
        [x_b, jnp.zeros((N, Cin, 1), jnp.bfloat16)], axis=-1)        # zero slot
    g = jnp.take(x_ext, jnp.asarray(_GATHER_IDX), axis=2)            # (N,Cin,T*HoWo)
    g = g.reshape(N, Cin, T, Ho * Wo)
    patches = jnp.transpose(g, (2, 1, 0, 3)).reshape(K, M)           # rows=(tap,cin)
    patches = jnp.pad(patches, ((0, 0), (0, M_pad - M)))             # lanes -> 128x

    # --- glue: fused masked weight (3*Cout, K) and bias (3*Cout, 1) ----------
    def gather_taps(w, taps):
        tapset = set(taps)
        live = np.array([1.0 if t in tapset else 0.0 for t in ALL_TAPS],
                        np.float32)
        gw = jnp.stack([w[:, :, kh, kw] for kh, kw in ALL_TAPS], axis=1)  # (Cout,T,Cin)
        return (gw * live[None, :, None]).reshape(Cout, K)

    w_fused = jnp.concatenate(
        [gather_taps(w_up, UP_TAPS),
         gather_taps(w_left, LEFT_TAPS),
         gather_taps(w_right, RIGHT_TAPS)], axis=0).astype(jnp.bfloat16)  # (GC, K)
    b_fused = jnp.concatenate([b_up, b_left, b_right]).reshape(GC, 1)
    b_fused = b_fused.astype(jnp.float32)

    # --- Pallas: one fused MXU matmul per lane tile ---------------------------
    out = pl.pallas_call(
        kagome_fused_conv_kernel,
        out_shape=jax.ShapeDtypeStruct((GC, M_pad), jnp.float32),
        grid=(num_tiles,),
        in_specs=[
            pl.BlockSpec((K, lane_tile), lambda i: (0, i)),
            pl.BlockSpec((GC, K), lambda i: (0, 0)),
            pl.BlockSpec((GC, 1), lambda i: (0, 0)),
        ],
        out_specs=pl.BlockSpec((GC, lane_tile), lambda i: (0, i)),
        compiler_params=pltpu.CompilerParams(dimension_semantics=("parallel",)),
    )(patches, w_fused, b_fused)                             # (GC, M_pad) f32

    # --- glue: un-flatten, interleave the 2x2 Kagome cells, zero masked sites -
    out3 = out[:, :M].reshape(3, Cout, N, Ho, Wo)
    up = jnp.transpose(out3[0], (1, 0, 2, 3))                # (N, Cout, Ho, Wo)
    left = jnp.transpose(out3[1], (1, 0, 2, 3))
    right = jnp.transpose(out3[2], (1, 0, 2, 3))
    row_even = jnp.stack([up, jnp.zeros_like(up)], axis=-1)  # (N,C,Ho,Wo,2)
    row_odd = jnp.stack([left, right], axis=-1)              # (N,C,Ho,Wo,2)
    y = jnp.stack([row_even, row_odd], axis=3)               # (N,C,Ho,2,Wo,2)
    y = y.reshape(N, Cout, 2 * Ho, 2 * Wo)
    y = jnp.where(jnp.asarray(_ZERO_MASK)[None, None], y, 0.0)  # select, no scatter
    return y


def kagome_reference(x, w_up, b_up, w_left, b_left, w_right, b_right):
    """Pure-JAX reference of KagomeConv2D.forward (independent construction:
    explicit pad + scatter fixups + three masked convs).  Uses bf16-rounded
    operands (same quantization the kernel applies) with a full f32 conv, so
    the comparison isolates structural correctness."""
    N, Cin, H, W = x.shape
    Cout = w_up.shape[0]
    xp = jnp.pad(x, ((0, 0), (0, 0), (1, 1), (1, 1)))
    dst = np.asarray(FIX_DST)
    src = np.asarray(FIX_SRC)
    xp = xp.at[:, :, dst[:, 0], dst[:, 1]].set(xp[:, :, src[:, 0], src[:, 1]])
    xp = xp.astype(jnp.bfloat16).astype(jnp.float32)

    def masked_conv(w, b, taps):
        m = np.zeros((1, 1, KERNEL_SIZE, KERNEL_SIZE), np.float32)
        for kh, kw in taps:
            m[0, 0, kh, kw] = 1.0
        wm = (w * jnp.asarray(m)).astype(jnp.bfloat16).astype(jnp.float32)
        o = jax.lax.conv_general_dilated(
            xp, wm, window_strides=(STRIDE, STRIDE), padding="VALID",
            dimension_numbers=("NCHW", "OIHW", "NCHW"),
            precision=jax.lax.Precision.HIGHEST)
        return o + b[None, :, None, None]

    up = masked_conv(w_up, b_up, UP_TAPS)
    left = masked_conv(w_left, b_left, LEFT_TAPS)
    right = masked_conv(w_right, b_right, RIGHT_TAPS)
    Ho, Wo = up.shape[2], up.shape[3]

    y = jnp.zeros((N, Cout, 2 * Ho, 2 * Wo), jnp.float32)
    y = y.at[:, :, 0::2, 0::2].set(up)      # even row, even col = up
    y = y.at[:, :, 1::2, 0::2].set(left)    # odd row,  even col = left
    y = y.at[:, :, 1::2, 1::2].set(right)   # odd row,  odd col  = right
    zr = np.asarray(ZERO_POS)
    y = y.at[:, :, zr[:, 0], zr[:, 1]].set(0.0)
    return y


if __name__ == "__main__":
    key = jax.random.PRNGKey(0)
    ks = jax.random.split(key, 7)

    # KagomeConv2D hard-codes an 8x8 lattice (10x10 after padding).
    N, Cin, H, W = 2, 4, 8, 8
    Cout = 8

    x = jax.random.normal(ks[0], (N, Cin, H, W), jnp.float32)

    # Deterministic Conv2d-style init: weight (Cout,Cin,4,4), bias (Cout,).
    fan_in = Cin * KERNEL_SIZE * KERNEL_SIZE
    bound = 1.0 / float(np.sqrt(fan_in))

    def init_wb(kw_, kb_):
        w = jax.random.uniform(kw_, (Cout, Cin, KERNEL_SIZE, KERNEL_SIZE),
                               jnp.float32, -bound, bound)
        b = jax.random.uniform(kb_, (Cout,), jnp.float32, -bound, bound)
        return w, b

    w_up, b_up = init_wb(ks[1], ks[2])
    w_left, b_left = init_wb(ks[3], ks[4])
    w_right, b_right = init_wb(ks[5], ks[6])

    kagome_jit = jax.jit(kagome_conv2d)
    out = jax.block_until_ready(
        kagome_jit(x, w_up, b_up, w_left, b_left, w_right, b_right))

    ref = kagome_reference(x, w_up, b_up, w_left, b_left, w_right, b_right)
    np.testing.assert_allclose(np.asarray(out), np.asarray(ref),
                               rtol=1e-3, atol=1e-3)

    print("KERNEL_OK")
</pallas_src>

<mosaic_0001>
module attributes {stable_mosaic.version = 11 : i64} {
  func.func @kagome_fused_conv_kernel(%arg0: i32, %arg1: memref<36x128xbf16, #tpu.memory_space<vmem>>, %arg2: memref<24x36xbf16, #tpu.memory_space<vmem>>, %arg3: memref<24x1xf32, #tpu.memory_space<vmem>>, %arg4: memref<24x128xf32, #tpu.memory_space<vmem>>) attributes {dimension_semantics = [#tpu.dimension_semantics<parallel>], iteration_bounds = array<i64: 1>, scalar_prefetch = 0 : i64, scratch_operands = 0 : i64, tpu.core_type = #tpu.core_type<tc>, window_params = [{transform_indices = @transform_0, window_bounds = array<i64: 36, 128>}, {pipeline_mode = #tpu.pipeline_mode<synchronous>, transform_indices = @transform_1, window_bounds = array<i64: 24, 36>}, {pipeline_mode = #tpu.pipeline_mode<synchronous>, transform_indices = @transform_2, window_bounds = array<i64: 24, 1>}, {transform_indices = @transform_3, window_bounds = array<i64: 24, 128>}]} {
    %c0 = arith.constant 0 : index
    %c0_0 = arith.constant 0 : index
    %0 = vector.load %arg2[%c0, %c0_0] : memref<24x36xbf16, #tpu.memory_space<vmem>>, vector<24x36xbf16>
    %c0_1 = arith.constant 0 : index
    %c0_2 = arith.constant 0 : index
    %1 = vector.load %arg1[%c0_1, %c0_2] : memref<36x128xbf16, #tpu.memory_space<vmem>>, vector<36x128xbf16>
    %cst = arith.constant dense<0.000000e+00> : vector<24x128xf32>
    %2 = tpu.matmul %0, %1, %cst {dimension_numbers = #tpu.dot_dimension_numbers<[1], [0], [0], [1], [0, 0, 1, 1], [], []>} : vector<24x36xbf16>, vector<36x128xbf16>, vector<24x128xf32> -> vector<24x128xf32>
    %c0_3 = arith.constant 0 : index
    %c0_4 = arith.constant 0 : index
    %3 = vector.load %arg3[%c0_3, %c0_4] : memref<24x1xf32, #tpu.memory_space<vmem>>, vector<24x1xf32>
    %4 = vector.broadcast %3 : vector<24x1xf32> to vector<24x128xf32>
    %5 = arith.addf %2, %4 : vector<24x128xf32>
    %c0_5 = arith.constant 0 : index
    %c0_6 = arith.constant 0 : index
    %6 = vector.load %arg4[%c0_5, %c0_6] : memref<24x128xf32, #tpu.memory_space<vmem>>, vector<24x128xf32>
    tpu.vector_store %arg4[%c0_5, %c0_6], %5 {strides = array<i32>} : memref<24x128xf32, #tpu.memory_space<vmem>>, vector<24x128xf32>,
    return
  }
  func.func @transform_0(%arg0: i32) -> (i32, i32) {
    %c0_i32 = arith.constant 0 : i32
    %c0_i32_0 = arith.constant 0 : i32
    return %c0_i32, %arg0 : i32, i32
  }
  func.func @transform_1(%arg0: i32) -> (i32, i32) {
    %c0_i32 = arith.constant 0 : i32
    %c0_i32_0 = arith.constant 0 : i32
    %c0_i32_1 = arith.constant 0 : i32
    return %c0_i32, %c0_i32_0 : i32, i32
  }
  func.func @transform_2(%arg0: i32) -> (i32, i32) {
    %c0_i32 = arith.constant 0 : i32
    %c0_i32_0 = arith.constant 0 : i32
    %c0_i32_1 = arith.constant 0 : i32
    return %c0_i32, %c0_i32_0 : i32, i32
  }
  func.func @transform_3(%arg0: i32) -> (i32, i32) {
    %c0_i32 = arith.constant 0 : i32
    %c0_i32_0 = arith.constant 0 : i32
    return %c0_i32, %arg0 : i32, i32
  }
}

</mosaic_0001>

<bundles_post_ra>
// kernel: kagome_conv2d.1
= control target key start
LH: loop header
LB: loop body
LE: loop exit
PB: predicated region body
PF: predicated region fallthrough
CT: control target
= control target key end

     0   :  { %v123_v1 = vmov 0   ;;  %vm71_vm0 = vcmask 1041408   ;;  %vm64_vm1 = vcmask 293888   ;;  %s177_s0 = inlined_call_operand.vmem [shape: bf16[36,128], index: 0, kind: input, shape index: {}]   ;;  %s178_s2 = inlined_call_operand.vmem [shape: f32[24,1], index: 2, kind: input, shape index: {}]   ;;  %s179_s1 = inlined_call_operand.vmem [shape: bf16[24,36], index: 1, kind: input, shape index: {}]   ;;  %s180_s3 = inlined_call_operand.vmem [shape: f32[24,128], index: 3, kind: output, shape index: {}]  }
   0x1   :  { %v22_v0 = vld [vmem:[%s177_s0 + $0x10] sm:$0x3]  ;;  %121 = vset.pattern.permute.xlu0 %v123_v1  ;;  %122 = vset.pattern.permute.xlu1 %v123_v1  ;;  %v23_v3 = vld [vmem:[%s178_s2] sm:$0xff]  ;;  %v116_v7 = vld [vmem:[%s177_s0 + $0x8] sm:$0xff] }
   0x2   :  { %v58_v2 = vunpack.c.l.b16 %v22_v0  ;;  %28 = vperm.xlu0 %121, %v23_v3   ;;  %v25_v4 = vld [vmem:[%s178_s2 + $0x10] sm:$0xff]  ;;  %v17_v8 = vld [vmem:[%s179_s1 + $0x8] sm:$0xf]  ;;  %v115_v11 = vld [vmem:[%s177_s0] sm:$0xff] }
   0x3   :  { %38 = vperm.xlu1 %122, %v25_v4   ;;  %v24_v9 = vld [vmem:[%s178_s2 + $0x8] sm:$0xff]  ;;  %v46_v10 = vunpack.c.l.b16 %v17_v8  ;;  %v114_v12 = vld [vmem:[%s179_s1] sm:$0xff] }
   0x4   :  { %v61_v5 = vpack.c.b16 %v58_v2, %v58_v2 }
   0x5   :  { %v48_v13 = vpack.c.b16 %v46_v10, %v46_v10 }
   0x6   :  { %v73_v6 = vsel %vm71_vm0, %v61_v5, 0 }
   0x7   :  { %80 = vmatpush.bf16.msra.mxu0 %v73_v6  ;;  %117 = vmatpush.bf16.msra.mxu1 %v73_v6 }
   0xa   :  { %33 = vperm.xlu0 %121, %v24_v9  }
   0xb   :  { %81 = vmatpush.bf16.msra.mxu0 %v116_v7  ;;  %118 = vmatpush.bf16.msra.mxu1 %v116_v7 }
   0xf   :  { %82 = vmatpush.bf16.msra.mxu0 %v115_v11  ;;  %119 = vmatpush.bf16.msra.mxu1 %v115_v11 }
  0x12   :  { %112 = vmatmul.msk.bf16.vlgmr.msra.gmra.mxu0 %vm64_vm1, %v114_v12  ;;  %113 = vmatmul.msk.bf16.vlgmr.msra.gmra.mxu1 %vm64_vm1, %v48_v13 }
  0x74   :  { %v29_v14 = vpop.permute.xlu0 %28 }
  0x75   :  { %v39_v15 = vpop.permute.xlu1 %38 }
  0x7c   :  { %v34_v20 = vpop.permute.xlu0 %33 }
  0x8f   :  { %v84_v16 = vpop.f32.mrf.mxu0  ;;  %v89_v17 = vpop.f32.mrf.mxu1 }
  0x90   :  { %v85_v18 = vadd.f32 %v84_v16, %v29_v14  ;;  %v90_v19 = vadd.f32 %v89_v17, %v39_v15 }
  0x92   :  { %93 = vst [vmem:[%s180_s3] sm:$0xff] %v85_v18 }
  0x93   :  { %95 = vst [vmem:[%s180_s3 + $0x10] sm:$0xff] %v90_v19 }
  0x97   :  { %v86_v21 = vpop.f32.mrf.mxu0  ;;  %v91_v22 = vpop.f32.mrf.mxu1 }
  0x98   :  { %v87_v23 = vadd.f32 %v86_v21, %v34_v20 }
  0x9a   :  { %94 = vst [vmem:[%s180_s3 + $0x8] sm:$0xff] %v87_v23 }

</bundles_post_ra>
